<compile_context>
chip_gen: v6e
topology: v6e:2x2x1
jax: 0.10.0
libtpu: 0.0.40
codegen_flags: <defaults>
</compile_context>

<pallas_src>
import jax
import jax.numpy as jnp
from jax.experimental import pallas as pl
from jax.experimental.pallas import tpu as pltpu


def _policy_kernel(xt_ref, w1t_ref, b1t_ref, w2t_ref, b2t_ref, out_ref):
    # xT tile: (obs_dim, tb), batch on lanes (lane-dense).
    xt = xt_ref[...]

    # Hidden layer: hT = ReLU(W1^T @ xT + b1), shape (hidden_p, tb).
    ht = jnp.dot(w1t_ref[...], xt, preferred_element_type=jnp.float32)
    ht = jnp.maximum(ht + b1t_ref[...], 0.0)

    # Output logits: logitsT = W2^T @ hT + b2, shape (n_actions, tb).
    logits = jnp.dot(w2t_ref[...], ht.astype(w2t_ref.dtype),
                     preferred_element_type=jnp.float32) + b2t_ref[...]

    # Numerically stable softmax over the action (sublane) axis.
    # Exact divide: keeps probabilities normalized to f32 precision.
    m = jnp.max(logits, axis=0, keepdims=True)
    e = jnp.exp(logits - m)
    denom = jnp.sum(e, axis=0, keepdims=True)
    out_ref[...] = (e / denom).astype(out_ref.dtype)


def _round_up(n, m):
    return ((n + m - 1) // m) * m


def _cdiv(a, b):
    return -(-a // b)


def policy_forward(x, w1, b1, w2, b2, *, block_b=8192,
                   compute_dtype=jnp.float32):
    """Full MLP + softmax in a single batch-tiled, lane-dense Pallas kernel.

    x  : (B, obs_dim) float32
    w1 : (obs_dim, 64) float32, b1 : (1, 64) float32     (transpose of PyTorch
    w2 : (64, n_actions) float32, b2 : (1, n_actions)     nn.Linear.weight)
    returns (B, n_actions) float32 probabilities.
    """
    B, obs_dim = x.shape
    hidden = w1.shape[1]
    n_actions = w2.shape[1]

    # --- Pad hidden dim to a multiple of 128 (lane/MXU aligned).
    # ReLU(x @ 0 + 0) = 0 and the zero rows of W2 contribute nothing, so the
    # result is bit-identical to the unpadded network.
    hidden_p = _round_up(max(hidden, 128), 128)
    if hidden_p != hidden:
        w1 = jnp.pad(w1, ((0, 0), (0, hidden_p - hidden)))
        b1 = jnp.pad(b1, ((0, 0), (0, hidden_p - hidden)))
        w2 = jnp.pad(w2, ((0, hidden_p - hidden), (0, 0)))

    # --- Grid-step / tile selection.
    #   * steps = ceil(B / block_b), but >= 2 for large B so v7x's two
    #     TensorCores both get work on the "parallel" axis.
    #   * tb = round_up(ceil(B / steps), 128) keeps batch padding within one
    #     128-lane group instead of up to a whole tile.
    steps = max(1, _cdiv(B, block_b))
    if B >= 256 and steps < 2:
        steps = 2
    tb = _round_up(_cdiv(B, steps), 128)
    b_pad = tb * steps

    # --- Transposed, lane-dense layouts: batch lives on the lane axis.
    # Zero-padded batch columns yield softmax(b2) (valid, no NaN) and are
    # sliced away below.
    xt = jnp.pad(x, ((0, b_pad - B), (0, 0))).T          # (obs_dim,  b_pad)
    w1t = w1.T                                           # (hidden_p, obs_dim)
    w2t = w2.T                                           # (n_actions, hidden_p)
    b1t = b1.T                                           # (hidden_p, 1)  f32
    b2t = b2.T                                           # (n_actions, 1) f32

    # Optional bf16 MXU inputs (halves x/W DMA bytes); accumulation, biases and
    # the softmax epilogue stay f32 (correct split for v5e too).
    xt = xt.astype(compute_dtype)
    w1t = w1t.astype(compute_dtype)
    w2t = w2t.astype(compute_dtype)

    out_t = pl.pallas_call(
        _policy_kernel,
        out_shape=jax.ShapeDtypeStruct((n_actions, b_pad), jnp.float32),
        grid_spec=pltpu.PrefetchScalarGridSpec(
            num_scalar_prefetch=0,
            grid=(steps,),
            in_specs=[
                # xT tile marches over the batch (lane axis); weights/biases
                # stay resident in VMEM across all grid steps.
                pl.BlockSpec((obs_dim, tb), lambda i: (0, i)),
                pl.BlockSpec((hidden_p, obs_dim), lambda i: (0, 0)),
                pl.BlockSpec((hidden_p, 1), lambda i: (0, 0)),
                pl.BlockSpec((n_actions, hidden_p), lambda i: (0, 0)),
                pl.BlockSpec((n_actions, 1), lambda i: (0, 0)),
            ],
            # Lane-dense output block: (n_actions, tb) -> unmasked stores.
            out_specs=pl.BlockSpec((n_actions, tb), lambda i: (0, i)),
        ),
        compiler_params=pltpu.CompilerParams(
            # Batch axis is embarrassingly parallel -> shards across v7x's
            # 2 TensorCores; no-op on v5e/v6e.
            dimension_semantics=("parallel",),
            # Default scoped VMEM (16 MiB v5e / 32 MiB v6e,v7x) is ample for
            # the default tb; set vmem_limit_bytes here if pushing block_b
            # toward 32k+.
        ),
    )(xt, w1t, b1t, w2t, b2t)

    # (n_actions, b_pad) -> (B, n_actions): wrapper-side layout plumbing only.
    return out_t[:, :B].T


def init_params(key, obs_dim, hidden, n_actions):
    """Deterministic synthetic parameters (same shapes as the nn.Linear layers)."""
    k1, k2, k3, k4 = jax.random.split(key, 4)
    # PyTorch Linear default init: U(-1/sqrt(fan_in), 1/sqrt(fan_in))
    lim1 = 1.0 / jnp.sqrt(obs_dim)
    lim2 = 1.0 / jnp.sqrt(hidden)
    w1 = jax.random.uniform(k1, (obs_dim, hidden), jnp.float32, -lim1, lim1)
    b1 = jax.random.uniform(k2, (1, hidden), jnp.float32, -lim1, lim1)
    w2 = jax.random.uniform(k3, (hidden, n_actions), jnp.float32, -lim2, lim2)
    b2 = jax.random.uniform(k4, (1, n_actions), jnp.float32, -lim2, lim2)
    return w1, b1, w2, b2


def _reference(x, w1, b1, w2, b2):
    h = jnp.maximum(x @ w1 + b1, 0.0)
    return jax.nn.softmax(h @ w2 + b2, axis=-1)


if __name__ == "__main__":
    key = jax.random.PRNGKey(0)
    kx, kp, kx2 = jax.random.split(key, 3)

    # Small shapes consistent with the module: batch=2 observations of dim 8,
    # hidden=64 (fixed by the module), 4 discrete actions.
    B, obs_dim, hidden, n_actions = 2, 8, 64, 4

    x = jax.random.normal(kx, (B, obs_dim), jnp.float32)
    w1, b1, w2, b2 = init_params(kp, obs_dim, hidden, n_actions)

    probs = policy_forward(x, w1, b1, w2, b2)
    probs = jax.block_until_ready(probs)

    ref = _reference(x, w1, b1, w2, b2)
    assert probs.shape == (B, n_actions)
    assert jnp.allclose(probs, ref, atol=1e-5), "mismatch vs reference (small batch)"
    assert jnp.allclose(jnp.sum(probs, axis=-1), 1.0, atol=1e-5)

    # Exercise the multi-step grid + batch-padding path (rollout-style).
    B2 = 300
    x2 = jax.random.normal(kx2, (B2, obs_dim), jnp.float32)
    probs2 = policy_forward(x2, w1, b1, w2, b2, block_b=128)
    probs2 = jax.block_until_ready(probs2)
    ref2 = _reference(x2, w1, b1, w2, b2)
    assert probs2.shape == (B2, n_actions)
    assert jnp.allclose(probs2, ref2, atol=1e-5), "mismatch vs reference (tiled batch)"
    assert jnp.allclose(jnp.sum(probs2, axis=-1), 1.0, atol=1e-5)

    # TODO(synk): get_action's numpy categorical sampling / log-prob pick and the
    # Adam optimizer are host-side / training concerns, not part of the forward kernel.

    print("KERNEL_OK")
</pallas_src>

<mosaic_0001>
module attributes {stable_mosaic.version = 11 : i64} {
  func.func @_policy_kernel(%arg0: i32, %arg1: memref<8x128xf32, #tpu.memory_space<vmem>>, %arg2: memref<128x8xf32, #tpu.memory_space<vmem>>, %arg3: memref<128x1xf32, #tpu.memory_space<vmem>>, %arg4: memref<4x128xf32, #tpu.memory_space<vmem>>, %arg5: memref<4x1xf32, #tpu.memory_space<vmem>>, %arg6: memref<4x128xf32, #tpu.memory_space<vmem>>) attributes {dimension_semantics = [#tpu.dimension_semantics<parallel>], iteration_bounds = array<i64: 1>, scalar_prefetch = 0 : i64, scratch_operands = 0 : i64, tpu.core_type = #tpu.core_type<tc>, window_params = [{transform_indices = @transform_0, window_bounds = array<i64: 8, 128>}, {pipeline_mode = #tpu.pipeline_mode<synchronous>, transform_indices = @transform_1, window_bounds = array<i64: 128, 8>}, {pipeline_mode = #tpu.pipeline_mode<synchronous>, transform_indices = @transform_2, window_bounds = array<i64: 128, 1>}, {pipeline_mode = #tpu.pipeline_mode<synchronous>, transform_indices = @transform_3, window_bounds = array<i64: 4, 128>}, {pipeline_mode = #tpu.pipeline_mode<synchronous>, transform_indices = @transform_4, window_bounds = array<i64: 4, 1>}, {transform_indices = @transform_5, window_bounds = array<i64: 4, 128>}]} {
    %c0 = arith.constant 0 : index
    %c0_0 = arith.constant 0 : index
    %0 = vector.load %arg1[%c0, %c0_0] : memref<8x128xf32, #tpu.memory_space<vmem>>, vector<8x128xf32>
    %c0_1 = arith.constant 0 : index
    %c0_2 = arith.constant 0 : index
    %1 = vector.load %arg2[%c0_1, %c0_2] : memref<128x8xf32, #tpu.memory_space<vmem>>, vector<128x8xf32>
    %cst = arith.constant dense<0.000000e+00> : vector<128x128xf32>
    %2 = tpu.matmul %1, %0, %cst {dimension_numbers = #tpu.dot_dimension_numbers<[1], [0], [0], [1], [0, 0, 1, 1], [], []>} : vector<128x8xf32>, vector<8x128xf32>, vector<128x128xf32> -> vector<128x128xf32>
    %c0_3 = arith.constant 0 : index
    %c0_4 = arith.constant 0 : index
    %3 = vector.load %arg3[%c0_3, %c0_4] : memref<128x1xf32, #tpu.memory_space<vmem>>, vector<128x1xf32>
    %4 = vector.broadcast %3 : vector<128x1xf32> to vector<128x128xf32>
    %5 = arith.addf %2, %4 : vector<128x128xf32>
    %cst_5 = arith.constant 0.000000e+00 : f32
    %6 = vector.broadcast %cst_5 : f32 to vector<128x128xf32>
    %7 = arith.maximumf %5, %6 : vector<128x128xf32>
    %c0_6 = arith.constant 0 : index
    %c0_7 = arith.constant 0 : index
    %8 = vector.load %arg4[%c0_6, %c0_7] : memref<4x128xf32, #tpu.memory_space<vmem>>, vector<4x128xf32>
    %cst_8 = arith.constant dense<0.000000e+00> : vector<4x128xf32>
    %9 = tpu.matmul %8, %7, %cst_8 {dimension_numbers = #tpu.dot_dimension_numbers<[1], [0], [0], [1], [0, 0, 1, 1], [], []>} : vector<4x128xf32>, vector<128x128xf32>, vector<4x128xf32> -> vector<4x128xf32>
    %c0_9 = arith.constant 0 : index
    %c0_10 = arith.constant 0 : index
    %10 = vector.load %arg5[%c0_9, %c0_10] : memref<4x1xf32, #tpu.memory_space<vmem>>, vector<4x1xf32>
    %11 = vector.broadcast %10 : vector<4x1xf32> to vector<4x128xf32>
    %12 = arith.addf %9, %11 : vector<4x128xf32>
    %cst_11 = arith.constant dense<0xFF800000> : vector<128xf32>
    %13 = vector.multi_reduction <maximumf>, %12, %cst_11 [0] : vector<4x128xf32> to vector<128xf32>
    %14 = vector.shape_cast %13 : vector<128xf32> to vector<1x128xf32>
    %15 = vector.broadcast %14 : vector<1x128xf32> to vector<4x128xf32>
    %16 = arith.subf %12, %15 : vector<4x128xf32>
    %17 = math.exp %16 : vector<4x128xf32>
    %cst_12 = arith.constant dense<0.000000e+00> : vector<128xf32>
    %18 = vector.multi_reduction <add>, %17, %cst_12 [0] : vector<4x128xf32> to vector<128xf32>
    %19 = vector.shape_cast %18 : vector<128xf32> to vector<1x128xf32>
    %20 = vector.broadcast %19 : vector<1x128xf32> to vector<4x128xf32>
    %21 = arith.divf %17, %20 : vector<4x128xf32>
    %c0_13 = arith.constant 0 : index
    %c0_14 = arith.constant 0 : index
    %22 = vector.load %arg6[%c0_13, %c0_14] : memref<4x128xf32, #tpu.memory_space<vmem>>, vector<4x128xf32>
    tpu.vector_store %arg6[%c0_13, %c0_14], %21 {strides = array<i32>} : memref<4x128xf32, #tpu.memory_space<vmem>>, vector<4x128xf32>,
    return
  }
  func.func @transform_0(%arg0: i32) -> (i32, i32) {
    %c0_i32 = arith.constant 0 : i32
    %c0_i32_0 = arith.constant 0 : i32
    return %c0_i32, %arg0 : i32, i32
  }
  func.func @transform_1(%arg0: i32) -> (i32, i32) {
    %c0_i32 = arith.constant 0 : i32
    %c0_i32_0 = arith.constant 0 : i32
    %c0_i32_1 = arith.constant 0 : i32
    return %c0_i32, %c0_i32_0 : i32, i32
  }
  func.func @transform_2(%arg0: i32) -> (i32, i32) {
    %c0_i32 = arith.constant 0 : i32
    %c0_i32_0 = arith.constant 0 : i32
    %c0_i32_1 = arith.constant 0 : i32
    return %c0_i32, %c0_i32_0 : i32, i32
  }
  func.func @transform_3(%arg0: i32) -> (i32, i32) {
    %c0_i32 = arith.constant 0 : i32
    %c0_i32_0 = arith.constant 0 : i32
    %c0_i32_1 = arith.constant 0 : i32
    return %c0_i32, %c0_i32_0 : i32, i32
  }
  func.func @transform_4(%arg0: i32) -> (i32, i32) {
    %c0_i32 = arith.constant 0 : i32
    %c0_i32_0 = arith.constant 0 : i32
    %c0_i32_1 = arith.constant 0 : i32
    return %c0_i32, %c0_i32_0 : i32, i32
  }
  func.func @transform_5(%arg0: i32) -> (i32, i32) {
    %c0_i32 = arith.constant 0 : i32
    %c0_i32_0 = arith.constant 0 : i32
    return %c0_i32, %arg0 : i32, i32
  }
}

</mosaic_0001>

<bundles_post_ra>
// kernel: tpu_custom_call.1
= control target key start
LH: loop header
LB: loop body
LE: loop exit
PB: predicated region body
PF: predicated region fallthrough
CT: control target
= control target key end

     0   :  { %vm134_vm0 = vcmask 64512   ;;  %v599_v4 = vmov 0   ;;  %s786_s0 = inlined_call_operand.vmem [shape: f32[8,128], index: 0, kind: input, shape index: {}]   ;;  %s787_s1 = inlined_call_operand.vmem [shape: f32[128,8], index: 1, kind: input, shape index: {}]   ;;  %s788_s2 = inlined_call_operand.vmem [shape: f32[128,1], index: 2, kind: input, shape index: {}]   ;;  %s789_s3 = inlined_call_operand.vmem [shape: f32[4,128], index: 3, kind: input, shape index: {}]   ;;  %s790_s4 = inlined_call_operand.vmem [shape: f32[4,1], index: 4, kind: input, shape index: {}]   ;;  %s791_s5 = inlined_call_operand.hbm [shape: f32[4,128], index: 5, kind: output, shape index: {}]  }
   0x1   :  { %v21_v0 = vld [vmem:[%s786_s0] sm:$0xff]  ;;  %v23_v2 = vld [vmem:[%s787_s1 + $0x8] sm:$0xff]  ;;  %v24_v3 = vld [vmem:[%s787_s1 + $0x10] sm:$0xff]  ;;  %571 = vset.pattern.permute.xlu0 %v599_v4  ;;  %572 = vset.pattern.permute.xlu1 %v599_v4 }
   0x2   :  { %v22_v1 = vld [vmem:[%s787_s1] sm:$0xff]  ;;  %506 = vmatprep.subr.mxu0 %v21_v0  ;;  %v25_v5 = vld [vmem:[%s787_s1 + $0x18] sm:$0xff]  ;;  %v51_v8 = vld [vmem:[%s788_s2 + $0x68] sm:$0xff] }
   0x3   :  { %508 = vmatprep.mubr.msk.f32.mxu0 %vm134_vm0, %v22_v1  ;;  %507 = vmatpush3.msra.mxu0 %v21_v0  ;;  %v26_v6 = vld [vmem:[%s787_s1 + $0x20] sm:$0xff]  ;;  %v53_v7 = vld [vmem:[%s788_s2 + $0x78] sm:$0xff]  ;;  %v52_v9 = vld [vmem:[%s788_s2 + $0x70] sm:$0xff] }
   0x4   :  { %509 = vmatmul.mubr.msk.f32.vlgmr.msra.gmra.mxu0 %vm134_vm0, %v23_v2  ;;  %131 = vperm.xlu0 %571, %v53_v7   ;;  %v27_v10 = vld [vmem:[%s787_s1 + $0x28] sm:$0xff]  ;;  %v50_v11 = vld [vmem:[%s788_s2 + $0x60] sm:$0xff]  ;;  %v28_v12 = vld [vmem:[%s787_s1 + $0x30] sm:$0xff] }
   0x5   :  { %511 = vmatprep.mubr.msk.f32.mxu0 %vm134_vm0, %v24_v3  ;;  %121 = vperm.xlu1 %572, %v51_v8   ;;  %v49_v13 = vld [vmem:[%s788_s2 + $0x58] sm:$0xff] }
   0x8   :  { %512 = vmatmul.mubr.msk.f32.gmra.mxu0 %vm134_vm0, %v25_v5  ;;  %126 = vperm.xlu0 %571, %v52_v9  }
   0x9   :  { %514 = vmatprep.mubr.msk.f32.mxu0 %vm134_vm0, %v26_v6  ;;  %116 = vperm.xlu1 %572, %v50_v11  }
   0xc   :  { %515 = vmatmul.mubr.msk.f32.gmra.mxu0 %vm134_vm0, %v27_v10 }
   0xd   :  { %10 = vsyncpa [#allocation3], 0  ;;  %517 = vmatprep.mubr.msk.f32.mxu0 %vm134_vm0, %v28_v12  ;;  %v29_v14 = vld [vmem:[%s787_s1 + $0x38] sm:$0xff]  ;;  %v48_v15 = vld [vmem:[%s788_s2 + $0x50] sm:$0xff]  ;;  %111 = vperm.xlu0 %571, %v49_v13   ;;  %v600_v35 = vmov 0.0   ;;  %vm601_vm1 = vmmov 0  }
   0xe   :  { %v30_v16 = vld [vmem:[%s787_s1 + $0x40] sm:$0xff]  ;;  %106 = vperm.xlu1 %572, %v48_v15   ;;  %v47_v17 = vld [vmem:[%s788_s2 + $0x48] sm:$0xff]  ;;  %v32_v20 = vld [vmem:[%s787_s1 + $0x50] sm:$0xff]  ;;  %532 = vmatprep.subr.mxu1 %v600_v35  ;;  %vm421_vm2 = vcmask 1043456  }
   0xf   :  { %v31_v18 = vld [vmem:[%s787_s1 + $0x48] sm:$0xff]  ;;  %v46_v19 = vld [vmem:[%s788_s2 + $0x40] sm:$0xff]  ;;  %v45_v21 = vld [vmem:[%s788_s2 + $0x38] sm:$0xff]  ;;  %564 = vmatprep.mubr.msk.f32.mxu1 %vm601_vm1, %v600_v35 }
  0x10   :  { %518 = vmatmul.mubr.msk.f32.gmra.mxu0 %vm134_vm0, %v29_v14  ;;  %v33_v22 = vld [vmem:[%s787_s1 + $0x58] sm:$0xff]  ;;  %v44_v23 = vld [vmem:[%s788_s2 + $0x30] sm:$0xff]  ;;  %v34_v24 = vld [vmem:[%s787_s1 + $0x60] sm:$0xff] }
  0x11   :  { %520 = vmatprep.mubr.msk.f32.mxu0 %vm134_vm0, %v30_v16  ;;  %101 = vperm.xlu0 %571, %v47_v17   ;;  %v43_v25 = vld [vmem:[%s788_s2 + $0x28] sm:$0xff]  ;;  %v42_v27 = vld [vmem:[%s788_s2 + $0x20] sm:$0xff]  ;;  %v36_v28 = vld [vmem:[%s787_s1 + $0x70] sm:$0xff] }
  0x12   :  { %96 = vperm.xlu1 %572, %v46_v19   ;;  %v35_v26 = vld [vmem:[%s787_s1 + $0x68] sm:$0xff]  ;;  %v41_v29 = vld [vmem:[%s788_s2 + $0x18] sm:$0xff]  ;;  %v40_v31 = vld [vmem:[%s788_s2 + $0x10] sm:$0xff] }
  0x13   :  { %v37_v30 = vld [vmem:[%s787_s1 + $0x78] sm:$0xff]  ;;  %v39_v32 = vld [vmem:[%s788_s2 + $0x8] sm:$0xff]  ;;  %v38_v33 = vld [vmem:[%s788_s2] sm:$0xff] }
  0x14   :  { %521 = vmatmul.mubr.msk.f32.gmra.mxu0 %vm134_vm0, %v31_v18  ;;  %v345_v34 = vld [vmem:[%s790_s4] sm:$0xf] }
  0x15   :  { %523 = vmatprep.mubr.msk.f32.mxu0 %vm134_vm0, %v32_v20  ;;  %91 = vperm.xlu0 %571, %v45_v21  }
  0x16   :  { %86 = vperm.xlu1 %572, %v44_v23  }
  0x18   :  { %524 = vmatmul.mubr.msk.f32.gmra.mxu0 %vm134_vm0, %v33_v22 }
  0x19   :  { %526 = vmatprep.mubr.msk.f32.mxu0 %vm134_vm0, %v34_v24  ;;  %81 = vperm.xlu0 %571, %v43_v25  }
  0x1a   :  { %76 = vperm.xlu1 %572, %v42_v27  }
  0x1c   :  { %527 = vmatmul.mubr.msk.f32.gmra.mxu0 %vm134_vm0, %v35_v26 }
  0x1d   :  { %529 = vmatprep.mubr.msk.f32.mxu0 %vm134_vm0, %v36_v28  ;;  %71 = vperm.xlu0 %571, %v41_v29  }
  0x1e   :  { %66 = vperm.xlu1 %572, %v40_v31  }
  0x20   :  { %530 = vmatmul.mubr.msk.f32.gmra.mxu0 %vm134_vm0, %v37_v30 }
  0x21   :  { %61 = vperm.xlu0 %571, %v39_v32  }
  0x22   :  { %56 = vperm.xlu1 %572, %v38_v33  }
  0x25   :  { %348 = vperm.xlu0 %571, %v345_v34  }
  0x7f   :  { %v132_v41 = vpop.permute.xlu0 %131 }
  0x80   :  { %v122_v43 = vpop.permute.xlu1 %121 }
  0x83   :  { %v127_v46 = vpop.permute.xlu0 %126 }
  0x84   :  { %v117_v48 = vpop.permute.xlu1 %116 }
  0x88   :  { %v112_v51 = vpop.permute.xlu0 %111 }
  0x89   :  { %v107_v53 = vpop.permute.xlu1 %106 }
  0x8c   :  { %v102_v56 = vpop.permute.xlu0 %101 }
  0x8d   :  { %v97_v59 = vpop.permute.xlu1 %96 }
  0x90   :  { %v92_v2 = vpop.permute.xlu0 %91 }
  0x91   :  { %v87_v5 = vpop.permute.xlu1 %86 }
  0x94   :  { %v82_v10 = vpop.permute.xlu0 %81 }
  0x95   :  { %v77_v13 = vpop.permute.xlu1 %76 }
  0x98   :  { %v72_v18 = vpop.permute.xlu0 %71 }
  0x99   :  { %v67_v21 = vpop.permute.xlu1 %66 }
  0x9c   :  { %v62_v26 = vpop.permute.xlu0 %61 }
  0x9d   :  { %v57_v29 = vpop.permute.xlu1 %56 }
  0xc4   :  { %v753_v36 = vpop.f32.mrf.mxu0 }
  0xc5   :  { %v255_v30 = vadd.f32 %v753_v36, %v62_v26  ;;  %v344_v36 = vld [vmem:[%s789_s3] sm:$0xf]  ;;  %s602_s3 = smov [#allocation2]  }
  0xc6   :  { %v755_v37 = vpop.f32.mrf.mxu0  ;;  %s448_s7 = sshll.u32 %s602_s3, 4  ;;  %s449_s7 = int_to_ptr.vmem [resolvable:$true] %s448_s7 }
  0xc7   :  { %v250_v32 = vadd.f32 %v755_v37, %v57_v29  ;;  %v329_v34 = vmax.f32 %v255_v30, 0.0  ;;  %s577_s8 = scalar_lea.vmem %s449_s7, 64  ;;  %p582_p1 = scmp.lt.s32.totalorder %s449_s7, %s449_s7 }
  0xc8   :  { %v757_v38 = vpop.f32.mrf.mxu0  ;;  %p578_p0 = scmp.ne.s32.totalorder %s449_s7, %s577_s8  ;;  %p583_p2 = scmp.lt.s32.totalorder %s577_s8, %s577_s8 }
  0xc9   :  { %v265_v24 = vadd.f32 %v757_v38, %v72_v18  ;;  %v328_v38 = vmax.f32 %v250_v32, 0.0 }
  0xca   :  { %v759_v39 = vpop.f32.mrf.mxu0  ;;  %p584_p3 = por %p583_p2, %p582_p1 }
  0xcb   :  { %v260_v27 = vadd.f32 %v759_v39, %v67_v21  ;;  %v331_v31 = vmax.f32 %v265_v24, 0.0  ;;  %v349_v39 = vpop.permute.xlu0 %348 }
  0xcc   :  { %v516_v40 = vpop.f32.mrf.mxu0  ;;  %p585_p4 = pnand %p584_p3, %p578_p0 }
  0xcd   :  { %v275_v19 = vadd.f32 %v516_v40, %v82_v10  ;;  %v330_v33 = vmax.f32 %v260_v27, 0.0 }
  0xce   :  { %v269_v42 = vpop.f32.mrf.mxu0 }
  0xcf   :  { %v270_v22 = vadd.f32 %v269_v42, %v77_v13  ;;  %v333_v25 = vmax.f32 %v275_v19, 0.0 }
  0xd0   :  { %v519_v44 = vpop.f32.mrf.mxu0 }
  0xd1   :  { %v285_v14 = vadd.f32 %v519_v44, %v92_v2  ;;  %v332_v28 = vmax.f32 %v270_v22, 0.0 }
  0xd2   :  { %v279_v45 = vpop.f32.mrf.mxu0 }
  0xd3   :  { %v280_v16 = vadd.f32 %v279_v45, %v87_v5  ;;  %v335_v20 = vmax.f32 %v285_v14, 0.0 }
  0xd4   :  { %v522_v47 = vpop.f32.mrf.mxu0 }
  0xd5   :  { %v295_v8 = vadd.f32 %v522_v47, %v102_v56  ;;  %v334_v23 = vmax.f32 %v280_v16, 0.0 }
  0xd6   :  { %v289_v49 = vpop.f32.mrf.mxu0 }
  0xd7   :  { %v290_v11 = vadd.f32 %v289_v49, %v97_v59  ;;  %v337_v15 = vmax.f32 %v295_v8, 0.0 }
  0xd8   :  { %v525_v50 = vpop.f32.mrf.mxu0 }
  0xd9   :  { %v305_v3 = vadd.f32 %v525_v50, %v112_v51  ;;  %v336_v17 = vmax.f32 %v290_v11, 0.0 }
  0xda   :  { %v299_v52 = vpop.f32.mrf.mxu0 }
  0xdb   :  { %v300_v6 = vadd.f32 %v299_v52, %v107_v53  ;;  %v339_v9 = vmax.f32 %v305_v3, 0.0 }
  0xdc   :  { %v528_v54 = vpop.f32.mrf.mxu0 }
  0xdd   :  { %v315_v61 = vadd.f32 %v528_v54, %v122_v43  ;;  %v338_v12 = vmax.f32 %v300_v6, 0.0 }
  0xde   :  { %v309_v55 = vpop.f32.mrf.mxu0 }
  0xdf   :  { %v310_v0 = vadd.f32 %v309_v55, %v117_v48  ;;  %v341_v4 = vmax.f32 %v315_v61, 0.0 }
  0xe0   :  { %v531_v57 = vpop.f32.mrf.mxu0 }
  0xe1   :  { %v325_v58 = vadd.f32 %v531_v57, %v132_v41  ;;  %v340_v7 = vmax.f32 %v310_v0, 0.0 }
  0xe2   :  { %v319_v60 = vpop.f32.mrf.mxu0 }
  0xe3   :  { %v343_v62 = vmax.f32 %v325_v58, 0.0  ;;  %v320_v63 = vadd.f32 %v319_v60, %v127_v46 }
  0xe5   :  { %v342_v1 = vmax.f32 %v320_v63, 0.0  ;;  %533 = vmatpush3.msra.mxu1 %v343_v62 }
  0xe6   :  { %534 = vmatprep.subr.mxu1 %v600_v35 }
  0xe7   :  { %535 = vmatpush3.msra.mxu1 %v342_v1 }
  0xe8   :  { %536 = vmatprep.subr.mxu1 %v600_v35 }
  0xe9   :  { %537 = vmatpush3.msra.mxu1 %v341_v4 }
  0xea   :  { %538 = vmatprep.subr.mxu1 %v600_v35 }
  0xeb   :  { %539 = vmatpush3.msra.mxu1 %v340_v7 }
  0xec   :  { %540 = vmatprep.subr.mxu1 %v600_v35 }
  0xed   :  { %541 = vmatpush3.msra.mxu1 %v339_v9 }
  0xee   :  { %542 = vmatprep.subr.mxu1 %v600_v35 }
  0xef   :  { %543 = vmatpush3.msra.mxu1 %v338_v12 }
  0xf0   :  { %544 = vmatprep.subr.mxu1 %v600_v35 }
  0xf1   :  { %545 = vmatpush3.msra.mxu1 %v337_v15 }
  0xf2   :  { %546 = vmatprep.subr.mxu1 %v600_v35 }
  0xf3   :  { %547 = vmatpush3.msra.mxu1 %v336_v17 }
  0xf4   :  { %548 = vmatprep.subr.mxu1 %v600_v35 }
  0xf5   :  { %549 = vmatpush3.msra.mxu1 %v335_v20 }
  0xf6   :  { %550 = vmatprep.subr.mxu1 %v600_v35 }
  0xf7   :  { %551 = vmatpush3.msra.mxu1 %v334_v23 }
  0xf8   :  { %552 = vmatprep.subr.mxu1 %v600_v35 }
  0xf9   :  { %553 = vmatpush3.msra.mxu1 %v333_v25 }
  0xfa   :  { %554 = vmatprep.subr.mxu1 %v600_v35 }
  0xfb   :  { %555 = vmatpush3.msra.mxu1 %v332_v28 }
  0xfc   :  { %556 = vmatprep.subr.mxu1 %v600_v35 }
  0xfd   :  { %557 = vmatpush3.msra.mxu1 %v331_v31 }
  0xfe   :  { %558 = vmatprep.subr.mxu1 %v600_v35 }
  0xff   :  { %559 = vmatpush3.msra.mxu1 %v330_v33 }
 0x100   :  { %560 = vmatprep.subr.mxu1 %v600_v35 }
 0x101   :  { %561 = vmatpush3.msra.mxu1 %v329_v34 }
 0x102   :  { %562 = vmatprep.subr.mxu1 %v600_v35 }
 0x103   :  { %563 = vmatpush3.msra.mxu1 %v328_v38 }
 0x104   :  { %565 = vmatmul.mubr.f32.vlgmr.msra.gmra.mxu1 %v344_v36 }
 0x1c4   :  { %v417_v37 = vpop.f32.mrf.mxu1 }
 0x1c5   :  { %v418_v40 = vadd.f32 %v417_v37, %v349_v39 }
 0x1c6   :  { %v566_v41 = vpop.f32.mrf.mxu1 }
 0x1c7   :  { %v422_v42 = vsel %vm421_vm2, %v418_v40, -inf }
 0x1c8   :  { %v423_v43 = vrot.slane %v422_v42, 4 }
 0x1ca   :  { %v424_v44 = vmax.f32 %v422_v42, %v423_v43 }
 0x1cc   :  { %v425_v45 = vrot.slane %v424_v44, 2 }
 0x1ce   :  { %v426_v46 = vmax.f32 %v424_v44, %v425_v45 }
 0x1d0   :  { %v427_v47 = vrot.slane %v426_v46, 1 }
 0x1d2   :  { %v428_v48 = vmax.f32 %v426_v46, %v427_v47 }
 0x1d4   :  { %v429_v49 = vsub.f32 %v418_v40, %v428_v48 }
 0x1d6   :  { %v430_v50 = vmul.f32 1.442695, %v429_v49 }
 0x1d8   :  { %573 = vpow2.f32 %v430_v50 }
 0x1e5   :  { %v574_v51 = vpop.eup %573 }
 0x1e6   :  { %v432_v52 = vsel %vm421_vm2, %v574_v51, 0.0 }
 0x1e7   :  { %v433_v35 = vrot.slane %v432_v52, 4 }
 0x1e9   :  { %v434_v53 = vadd.f32 %v433_v35, %v432_v52 }
 0x1eb   :  { %v435_v54 = vrot.slane %v434_v53, 2 }
 0x1ed   :  { %v436_v55 = vadd.f32 %v435_v54, %v434_v53 }
 0x1ef   :  { %v437_v56 = vrot.slane %v436_v55, 1 }
 0x1f1   :  { %v438_v57 = vadd.f32 %v437_v56, %v436_v55 }
 0x1f3   :  { %575 = vrcp.f32 %v438_v57 }
 0x200   :  { %v576_v58 = vpop.eup %575 }
 0x201   :  { %v440_v59 = vmul.f32 %v576_v58, %v574_v51 }
 0x203   :  { %441 = vst [vmem:[#allocation2] sm:$0xf] %v440_v59 }
 0x204   :  { %588 = shalt.err (!%p585_p4)
}
 0x205   :  { %451 = dma.vmem_to_hbm [thread:$0]  %s449_s7, 64, %s791_s5, [#allocation3]  }
 0x206   :  { %597 = dma.done.wait [#allocation3], 64  }
 0x207   :  { %598 = vsyncadd [#allocation3], 4294967232 }
 0x208   :  { %455 = vsyncpa [#allocation3], 1 }

</bundles_post_ra>
